<compile_context>
chip_gen: v5e
topology: v5e:2x2
jax: 0.10.0
libtpu: 0.0.40
codegen_flags: <defaults>
</compile_context>

<pallas_src>
import functools

import jax
import jax.numpy as jnp
from jax.experimental import pallas as pl
from jax.experimental.pallas import tpu as pltpu

_INV_SQRT2 = 0.7071067811865476
_MIB = 1024 * 1024


def _round_up(v, m):
    return (v + m - 1) // m * m


def _halo_off(w):
    """Sublane-aligned (multiple of 8) scratch offset >= w + 1."""
    return ((w + 1 + 7) // 8) * 8


def _gelu_exact(x, *, newton=True):
    """PyTorch-default GELU: 0.5*x*(1+erf(x/sqrt(2))).

    erf via Abramowitz & Stegun 7.1.26 (max abs err ~1.5e-7 in f32).  The
    rational term's divide is routed through the EUP (approx reciprocal,
    optionally one Newton step); exp also goes to the EUP.  Works for f32 or
    bf16 `x` (the reciprocal / exp chain always runs in f32 for robustness).
    """
    a1, a2, a3, a4, a5 = (0.254829592, -0.284496736, 1.421413741,
                          -1.453152027, 1.061405429)
    p = 0.3275911
    dt = x.dtype
    z = x * jnp.asarray(_INV_SQRT2, dt)
    za = jnp.abs(z)
    za32 = za.astype(jnp.float32)
    d32 = 1.0 + p * za32
    r = pl.reciprocal(d32, approx=True)
    if newton:
        r = r * (2.0 - d32 * r)            # one Newton step -> ~f32 exact
    r = r.astype(dt)
    e = jnp.exp(-(za32 * za32)).astype(dt)  # EUP
    poly = ((((a5 * r + a4) * r + a3) * r + a2) * r + a1) * r
    erf_abs = 1.0 - poly * e
    erf = jnp.where(z >= 0, erf_abs, -erf_abs)
    return 0.5 * x * (1.0 + erf)


def mlp_kernel(x_ref, w1_ref, b1_ref, dww_ref, dwb_ref, w2_ref, b2_ref,
               o_ref, h1pad_ref, *, W, TH, newton):
    """Grid = (batch, row-tile).  x_ref: (1, N, C1), resident per batch."""
    j = pl.program_id(1)
    nT = pl.num_programs(1)
    NT = TH * W                        # tokens handled by this tile
    OFF = _halo_off(W)                 # padded-scratch offset of the tile rows
    ew = h1pad_ref.dtype               # elementwise dtype (f32 or bf16)

    w1 = w1_ref[...]
    b1 = b1_ref[...]                   # (1, C2p) f32
    t0 = pl.multiple_of(j * NT, 8)     # first token of this tile

    # ---- fc1 for the tile rows (MXU); f32 accumulator dies at the store ----
    xc = x_ref[0, pl.ds(t0, NT), :]
    h1pad_ref[OFF:OFF + NT, :] = (
        jnp.dot(xc, w1, preferred_element_type=jnp.float32) + b1).astype(ew)

    # ---- one-image-row halo on each side (zero at the image border) --------
    zero_row = jnp.zeros((W, h1pad_ref.shape[1]), ew)
    top_start = j * NT - W
    bot_start = j * NT + NT
    if NT % 8 == 0 and W % 8 == 0:
        top_start = pl.multiple_of(top_start, 8)
    if NT % 8 == 0:
        bot_start = pl.multiple_of(bot_start, 8)

    @pl.when(j == 0)
    def _():
        h1pad_ref[OFF - W:OFF, :] = zero_row

    @pl.when(j > 0)
    def _():
        xt = x_ref[0, pl.ds(top_start, W), :]
        h1pad_ref[OFF - W:OFF, :] = (
            jnp.dot(xt, w1, preferred_element_type=jnp.float32) + b1).astype(ew)

    @pl.when(j == nT - 1)
    def _():
        h1pad_ref[OFF + NT:OFF + NT + W, :] = zero_row

    @pl.when(j < nT - 1)
    def _():
        xb = x_ref[0, pl.ds(bot_start, W), :]
        h1pad_ref[OFF + NT:OFF + NT + W, :] = (
            jnp.dot(xb, w1, preferred_element_type=jnp.float32) + b1).astype(ew)

    # ---- depthwise 3x3 (padding=1): 9 static slice-taps of padded scratch --
    # Only the two guard rows just outside the halo strips are ever read
    # uninitialized, and only at column-masked positions; jnp.where selects
    # (never multiplies garbage into the kept lane), so this is safe.
    dww = dww_ref[...]                                   # (9, C2p) ew, tap-major
    col = jax.lax.broadcasted_iota(jnp.int32, (NT, 1), 0) % W
    not_left = col != 0                                  # valid for dx = -1
    not_right = col != (W - 1)                           # valid for dx = +1

    def tap(dy, dx):
        start = OFF + dy * W + dx                        # static offset
        return h1pad_ref[start:start + NT, :]

    # dx = 0 column: no mask needed.
    acc = tap(0, 0) * dww[4:5, :]
    acc = acc + tap(-1, 0) * dww[1:2, :] + tap(1, 0) * dww[7:8, :]
    # dx = -1 / dx = +1 columns: accumulate each side, then ONE select per side.
    acc_l = (tap(-1, -1) * dww[0:1, :] + tap(0, -1) * dww[3:4, :]
             + tap(1, -1) * dww[6:7, :])
    acc_r = (tap(-1, 1) * dww[2:3, :] + tap(0, 1) * dww[5:6, :]
             + tap(1, 1) * dww[8:9, :])
    acc = acc + jnp.where(not_left, acc_l, 0)
    acc = acc + jnp.where(not_right, acc_r, 0)
    acc = acc + dwb_ref[...]

    # ---- GELU (exact, erf-based) + fc2 (MXU) --------------------------------
    g = _gelu_exact(acc, newton=newton)
    out = jnp.dot(g.astype(w2_ref.dtype), w2_ref[...],
                  preferred_element_type=jnp.float32) + b2_ref[...]
    o_ref[0] = out.astype(o_ref.dtype)


def _vmem_capacity_bytes():
    try:
        return int(pltpu.get_tpu_info().vmem_capacity_bytes)
    except Exception:            # non-TPU / older API: assume a 128 MiB part
        return 128 * _MIB


def _choose_tile_rows(h, w, *, batch, c2p, c1_out, ew_bytes, out_bytes, budget):
    """Largest h-divisor whose per-tile VMEM bytes fit `budget`.

    Keeps the tile token count sublane-aligned (or TH == h), and when
    batch == 1 prefers >= 2 row-tiles so both v7x TensorCores get work.
    """
    off = _halo_off(w)

    def var_bytes(th):
        nt = th * w
        return ((nt + 2 * off) * c2p * ew_bytes      # padded fc1 scratch
                + nt * c2p * 4                       # fc1 f32 accumulator
                + 4 * nt * c2p * ew_bytes            # live conv/GELU temps
                + 2 * nt * c1_out * out_bytes)       # double-buffered out block

    divs = [d for d in range(1, h + 1)
            if h % d == 0 and ((d * w) % 8 == 0 or d == h)]
    fit = [d for d in divs if var_bytes(d) <= budget]
    if not fit:
        return min(divs)
    if batch == 1:
        multi = [d for d in fit if d < h]            # nT >= 2 for megacore
        if multi:
            return max(multi)
    return max(fit)


def mlp_forward(x, w1, b1, dw_w, dw_b, w2, b2, h, w, *,
                tile_rows=None,
                matmul_dtype=jnp.bfloat16,
                elementwise_dtype=None,
                lane_dense_out=None):
    """SegFormer Mix-FFN forward.  x: (B, N, C1), N = h*w -> (B, N, C1).

    matmul_dtype: MXU operand dtype (f32 accumulation).  bfloat16 is
        recommended on all generations (v5e/v6e/v7x).
    elementwise_dtype: dtype of the conv-tap / GELU section.  None -> float32
        (use on v5e); jnp.bfloat16 halves VALU work on v6e/v7x.
    lane_dense_out: pad the output channel dim to a 128-lane multiple
        (unmasked stores but write amplification + a slice copy for small C1).
        Default: only when C1 is already a multiple of 128.
    """
    B, N, C1 = x.shape
    C2 = w1.shape[1]
    assert N == h * w, "token count must equal h*w"
    out_dtype = x.dtype

    f32 = jnp.float32
    mm = jnp.dtype(matmul_dtype) if matmul_dtype is not None else jnp.dtype(x.dtype)
    ew = jnp.dtype(f32) if elementwise_dtype is None else jnp.dtype(elementwise_dtype)
    if lane_dense_out is None:
        lane_dense_out = (C1 % 128 == 0)

    C2p = _round_up(C2, 128)
    C1out = _round_up(C1, 128) if lane_dense_out else C1

    # Zero-pad channel dims (preserves the math exactly); pack depthwise
    # weights (C2,3,3) -> (9, C2p), tap-major, channels on lanes.
    w1p = jnp.zeros((C1, C2p), f32).at[:, :C2].set(w1.astype(f32))
    w2p = jnp.zeros((C2p, C1out), f32).at[:C2, :C1].set(w2.astype(f32))
    b1p = jnp.zeros((1, C2p), f32).at[0, :C2].set(b1.astype(f32))
    b2p = jnp.zeros((1, C1out), f32).at[0, :C1].set(b2.astype(f32))
    dwbp = jnp.zeros((1, C2p), f32).at[0, :C2].set(dw_b.astype(f32)).astype(ew)
    dwwp = jnp.zeros((9, C2p), f32).at[:, :C2].set(
        jnp.transpose(dw_w.astype(f32), (1, 2, 0)).reshape(9, C2)).astype(ew)

    xk = x.astype(mm)
    w1k = w1p.astype(mm)
    w2k = w2p.astype(mm)

    # ---- generation-aware VMEM budgeting & tile selection -------------------
    cap = _vmem_capacity_bytes()
    if cap >= 96 * _MIB:
        vmem_limit = 96 * _MIB                        # 128 MiB parts (v5e/v6e)
    else:
        vmem_limit = max(min(44 * _MIB, int(cap * 0.7)), 8 * _MIB)  # v7x 64 MiB
    # Fixed per-step footprint: resident x + weights, counted double-buffered
    # (BlockSpec double-buffers even with a constant index_map).
    # TODO(synk): pipeline_mode=pl.Buffered(1) on the invariant weight inputs
    # would halve this; kept off here for lowering robustness.
    fixed = (2 * N * C1 * mm.itemsize
             + 2 * (C1 * C2p + C2p * C1out) * mm.itemsize
             + 2 * (16 * C2p + 2 * C1out) * 4)
    budget = max(int((vmem_limit - fixed) * 0.5), 2 * _MIB)

    if tile_rows is None:
        tile_rows = _choose_tile_rows(
            h, w, batch=B, c2p=C2p, c1_out=C1out,
            ew_bytes=ew.itemsize, out_bytes=jnp.dtype(out_dtype).itemsize,
            budget=budget)
    TH = int(tile_rows)
    if h % TH != 0:
        raise ValueError(f"tile_rows={TH} must divide h={h}")
    NT = TH * w
    if NT % 8 != 0 and TH != h:
        raise ValueError("tile token count (tile_rows*w) must be a multiple of"
                         " 8 unless tile_rows == h")
    nT = h // TH
    OFF = _halo_off(w)

    # Skip the Newton refinement of the approx reciprocal when the GELU result
    # is quantized to bf16 anyway (bf16 matmul or bf16 elementwise path).
    newton = (mm == jnp.dtype(f32)) and (ew == jnp.dtype(f32))

    kernel = functools.partial(mlp_kernel, W=w, TH=TH, newton=newton)
    out_p = pl.pallas_call(
        kernel,
        out_shape=jax.ShapeDtypeStruct((B, N, C1out), out_dtype),
        grid_spec=pltpu.PrefetchScalarGridSpec(
            num_scalar_prefetch=0,
            grid=(B, nT),
            in_specs=[
                pl.BlockSpec((1, N, C1), lambda b, j: (b, 0, 0)),   # x (resident)
                pl.BlockSpec((C1, C2p), lambda b, j: (0, 0)),       # fc1 weight
                pl.BlockSpec((1, C2p), lambda b, j: (0, 0)),        # fc1 bias
                pl.BlockSpec((9, C2p), lambda b, j: (0, 0)),        # dwconv taps
                pl.BlockSpec((1, C2p), lambda b, j: (0, 0)),        # dwconv bias
                pl.BlockSpec((C2p, C1out), lambda b, j: (0, 0)),    # fc2 weight
                pl.BlockSpec((1, C1out), lambda b, j: (0, 0)),      # fc2 bias
            ],
            out_specs=pl.BlockSpec((1, NT, C1out), lambda b, j: (b, j, 0)),
            scratch_shapes=[pltpu.VMEM((NT + 2 * OFF, C2p), ew)],
        ),
        compiler_params=pltpu.CompilerParams(
            dimension_semantics=("parallel", "parallel"),
            vmem_limit_bytes=int(vmem_limit)),
    )(xk, w1k, b1p, dwwp, dwbp, w2k, b2p)
    if C1out != C1:
        return out_p[:, :, :C1]
    return out_p


def mlp_reference(x, w1, b1, dw_w, dw_b, w2, b2, h, w):
    """Pure-JAX reference matching the PyTorch module semantics."""
    B, N, C1 = x.shape
    C2 = w1.shape[1]
    h1 = x @ w1 + b1                                          # (B, N, C2)
    img = jnp.transpose(h1, (0, 2, 1)).reshape(B, C2, h, w)   # NCHW
    conv = jax.lax.conv_general_dilated(
        img, dw_w.reshape(C2, 1, 3, 3),
        window_strides=(1, 1), padding=((1, 1), (1, 1)),
        dimension_numbers=("NCHW", "OIHW", "NCHW"),
        feature_group_count=C2)
    conv = conv + dw_b[None, :, None, None]
    tok = jnp.transpose(conv.reshape(B, C2, N), (0, 2, 1))    # (B, N, C2)
    g = jax.nn.gelu(tok, approximate=False)
    return g @ w2 + b2


if __name__ == "__main__":
    B, H, W = 2, 8, 8
    C1, C2 = 32, 64
    N = H * W

    key = jax.random.PRNGKey(0)
    ks = jax.random.split(key, 7)
    x = jax.random.normal(ks[0], (B, N, C1), jnp.float32)
    w1 = jax.random.normal(ks[1], (C1, C2), jnp.float32) * 0.1
    b1 = jax.random.normal(ks[2], (C2,), jnp.float32) * 0.1
    dw_w = jax.random.normal(ks[3], (C2, 3, 3), jnp.float32) * 0.1
    dw_b = jax.random.normal(ks[4], (C2,), jnp.float32) * 0.1
    w2 = jax.random.normal(ks[5], (C2, C1), jnp.float32) * 0.1
    b2 = jax.random.normal(ks[6], (C1,), jnp.float32) * 0.1

    ref = mlp_reference(x, w1, b1, dw_w, dw_b, w2, b2, H, W)

    # 1) Strict f32 path; tile_rows=2 -> 4 row-tiles per image, exercising
    #    both halo-recompute branches of the tiled depthwise conv.
    out = mlp_forward(x, w1, b1, dw_w, dw_b, w2, b2, H, W,
                      tile_rows=2, matmul_dtype=jnp.float32)
    out = jax.block_until_ready(out)
    assert out.shape == (B, N, C1)
    assert jnp.allclose(out, ref, atol=1e-3, rtol=1e-3), "f32 mismatch vs reference"

    # 2) bf16 matmuls + bf16 elementwise conv/GELU (v6e/v7x fast path).
    out_bf = mlp_forward(x, w1, b1, dw_w, dw_b, w2, b2, H, W,
                         tile_rows=2, matmul_dtype=jnp.bfloat16,
                         elementwise_dtype=jnp.bfloat16)
    out_bf = jax.block_until_ready(out_bf)
    assert out_bf.shape == (B, N, C1)
    assert jnp.allclose(out_bf, ref, atol=5e-2, rtol=5e-2), "bf16 mismatch vs reference"

    # 3) Default config (bf16 matmuls, f32 elementwise, auto tiling, native-
    #    width output -- the v5e-recommended setup).
    out_def = mlp_forward(x, w1, b1, dw_w, dw_b, w2, b2, H, W)
    out_def = jax.block_until_ready(out_def)
    assert out_def.shape == (B, N, C1)
    assert jnp.allclose(out_def, ref, atol=5e-2, rtol=5e-2), "default mismatch vs reference"

    print("KERNEL_OK")
</pallas_src>

<mosaic_0001>
module attributes {stable_mosaic.version = 11 : i64} {
  func.func @mlp_kernel(%arg0: i32, %arg1: i32, %arg2: memref<1x64x32xf32, #tpu.memory_space<vmem>>, %arg3: memref<32x128xf32, #tpu.memory_space<vmem>>, %arg4: memref<1x128xf32, #tpu.memory_space<vmem>>, %arg5: memref<9x128xf32, #tpu.memory_space<vmem>>, %arg6: memref<1x128xf32, #tpu.memory_space<vmem>>, %arg7: memref<128x32xf32, #tpu.memory_space<vmem>>, %arg8: memref<1x32xf32, #tpu.memory_space<vmem>>, %arg9: memref<1x16x32xf32, #tpu.memory_space<vmem>>, %arg10: memref<48x128xf32, #tpu.memory_space<vmem>>) attributes {dimension_semantics = [#tpu.dimension_semantics<parallel>, #tpu.dimension_semantics<parallel>], iteration_bounds = array<i64: 2, 4>, scalar_prefetch = 0 : i64, scratch_operands = 1 : i64, tpu.core_type = #tpu.core_type<tc>, window_params = [{transform_indices = @transform_0, window_bounds = array<i64: 1, 64, 32>}, {pipeline_mode = #tpu.pipeline_mode<synchronous>, transform_indices = @transform_1, window_bounds = array<i64: 32, 128>}, {pipeline_mode = #tpu.pipeline_mode<synchronous>, transform_indices = @transform_2, window_bounds = array<i64: 1, 128>}, {pipeline_mode = #tpu.pipeline_mode<synchronous>, transform_indices = @transform_3, window_bounds = array<i64: 9, 128>}, {pipeline_mode = #tpu.pipeline_mode<synchronous>, transform_indices = @transform_4, window_bounds = array<i64: 1, 128>}, {pipeline_mode = #tpu.pipeline_mode<synchronous>, transform_indices = @transform_5, window_bounds = array<i64: 128, 32>}, {pipeline_mode = #tpu.pipeline_mode<synchronous>, transform_indices = @transform_6, window_bounds = array<i64: 1, 32>}, {transform_indices = @transform_7, window_bounds = array<i64: 1, 16, 32>}]} {
    %c0 = arith.constant 0 : index
    %c0_0 = arith.constant 0 : index
    %0 = vector.load %arg3[%c0, %c0_0] : memref<32x128xf32, #tpu.memory_space<vmem>>, vector<32x128xf32>
    %c0_1 = arith.constant 0 : index
    %c0_2 = arith.constant 0 : index
    %1 = vector.load %arg4[%c0_1, %c0_2] : memref<1x128xf32, #tpu.memory_space<vmem>>, vector<1x128xf32>
    %c16_i32 = arith.constant 16 : i32
    %2 = arith.muli %arg1, %c16_i32 : i32
    %3 = tpu.assume_multiple %2, 8 : i32
    %c0_3 = arith.constant 0 : index
    %4 = arith.index_cast %3 : i32 to index
    %c0_4 = arith.constant 0 : index
    %5 = vector.load %arg2[%c0_3, %4, %c0_4] : memref<1x64x32xf32, #tpu.memory_space<vmem>>, vector<1x16x32xf32>
    %6 = vector.shape_cast %5 : vector<1x16x32xf32> to vector<16x32xf32>
    %cst = arith.constant dense<0.000000e+00> : vector<16x128xf32>
    %7 = tpu.matmul %6, %0, %cst {dimension_numbers = #tpu.dot_dimension_numbers<[1], [0], [0], [1], [0, 0, 1, 1], [], []>} : vector<16x32xf32>, vector<32x128xf32>, vector<16x128xf32> -> vector<16x128xf32>
    %8 = vector.broadcast %1 : vector<1x128xf32> to vector<16x128xf32>
    %9 = arith.addf %7, %8 : vector<16x128xf32>
    %c16 = arith.constant 16 : index
    %c0_5 = arith.constant 0 : index
    %10 = vector.load %arg10[%c16, %c0_5] : memref<48x128xf32, #tpu.memory_space<vmem>>, vector<16x128xf32>
    tpu.vector_store %arg10[%c16, %c0_5], %9 {strides = array<i32>} : memref<48x128xf32, #tpu.memory_space<vmem>>, vector<16x128xf32>,
    %cst_6 = arith.constant 0.000000e+00 : f32
    %11 = vector.broadcast %cst_6 : f32 to vector<8x128xf32>
    %c16_i32_7 = arith.constant 16 : i32
    %12 = arith.muli %arg1, %c16_i32_7 : i32
    %c8_i32 = arith.constant 8 : i32
    %13 = arith.subi %12, %c8_i32 : i32
    %c16_i32_8 = arith.constant 16 : i32
    %14 = arith.muli %arg1, %c16_i32_8 : i32
    %c16_i32_9 = arith.constant 16 : i32
    %15 = arith.addi %14, %c16_i32_9 : i32
    %16 = tpu.assume_multiple %13, 8 : i32
    %17 = tpu.assume_multiple %15, 8 : i32
    %c0_i32 = arith.constant 0 : i32
    %18 = arith.cmpi eq, %arg1, %c0_i32 : i32
    %19 = arith.extui %18 : i1 to i32
    %c0_i32_10 = arith.constant 0 : i32
    %20 = arith.cmpi ne, %19, %c0_i32_10 : i32
    scf.if %20 {
      %c8_61 = arith.constant 8 : index
      %c0_62 = arith.constant 0 : index
      %160 = vector.load %arg10[%c8_61, %c0_62] : memref<48x128xf32, #tpu.memory_space<vmem>>, vector<8x128xf32>
      tpu.vector_store %arg10[%c8_61, %c0_62], %11 {strides = array<i32>} : memref<48x128xf32, #tpu.memory_space<vmem>>, vector<8x128xf32>,
    } else {
    }
    %c0_i32_11 = arith.constant 0 : i32
    %21 = arith.cmpi sgt, %arg1, %c0_i32_11 : i32
    %22 = arith.extui %21 : i1 to i32
    %c0_i32_12 = arith.constant 0 : i32
    %23 = arith.cmpi ne, %22, %c0_i32_12 : i32
    scf.if %23 {
      %c0_61 = arith.constant 0 : index
      %160 = arith.index_cast %16 : i32 to index
      %c0_62 = arith.constant 0 : index
      %161 = vector.load %arg2[%c0_61, %160, %c0_62] : memref<1x64x32xf32, #tpu.memory_space<vmem>>, vector<1x8x32xf32>
      %162 = vector.shape_cast %161 : vector<1x8x32xf32> to vector<8x32xf32>
      %cst_63 = arith.constant dense<0.000000e+00> : vector<8x128xf32>
      %163 = tpu.matmul %162, %0, %cst_63 {dimension_numbers = #tpu.dot_dimension_numbers<[1], [0], [0], [1], [0, 0, 1, 1], [], []>} : vector<8x32xf32>, vector<32x128xf32>, vector<8x128xf32> -> vector<8x128xf32>
      %164 = vector.broadcast %1 : vector<1x128xf32> to vector<8x128xf32>
      %165 = arith.addf %163, %164 : vector<8x128xf32>
      %c8_64 = arith.constant 8 : index
      %c0_65 = arith.constant 0 : index
      %166 = vector.load %arg10[%c8_64, %c0_65] : memref<48x128xf32, #tpu.memory_space<vmem>>, vector<8x128xf32>
      tpu.vector_store %arg10[%c8_64, %c0_65], %165 {strides = array<i32>} : memref<48x128xf32, #tpu.memory_space<vmem>>, vector<8x128xf32>,
    } else {
    }
    %c3_i32 = arith.constant 3 : i32
    %24 = arith.cmpi eq, %arg1, %c3_i32 : i32
    %25 = arith.extui %24 : i1 to i32
    %c0_i32_13 = arith.constant 0 : i32
    %26 = arith.cmpi ne, %25, %c0_i32_13 : i32
    scf.if %26 {
      %c32 = arith.constant 32 : index
      %c0_61 = arith.constant 0 : index
      %160 = vector.load %arg10[%c32, %c0_61] : memref<48x128xf32, #tpu.memory_space<vmem>>, vector<8x128xf32>
      tpu.vector_store %arg10[%c32, %c0_61], %11 {strides = array<i32>} : memref<48x128xf32, #tpu.memory_space<vmem>>, vector<8x128xf32>,
    } else {
    }
    %c3_i32_14 = arith.constant 3 : i32
    %27 = arith.cmpi slt, %arg1, %c3_i32_14 : i32
    %28 = arith.extui %27 : i1 to i32
    %c0_i32_15 = arith.constant 0 : i32
    %29 = arith.cmpi ne, %28, %c0_i32_15 : i32
    scf.if %29 {
      %c0_61 = arith.constant 0 : index
      %160 = arith.index_cast %17 : i32 to index
      %c0_62 = arith.constant 0 : index
      %161 = vector.load %arg2[%c0_61, %160, %c0_62] : memref<1x64x32xf32, #tpu.memory_space<vmem>>, vector<1x8x32xf32>
      %162 = vector.shape_cast %161 : vector<1x8x32xf32> to vector<8x32xf32>
      %cst_63 = arith.constant dense<0.000000e+00> : vector<8x128xf32>
      %163 = tpu.matmul %162, %0, %cst_63 {dimension_numbers = #tpu.dot_dimension_numbers<[1], [0], [0], [1], [0, 0, 1, 1], [], []>} : vector<8x32xf32>, vector<32x128xf32>, vector<8x128xf32> -> vector<8x128xf32>
      %164 = vector.broadcast %1 : vector<1x128xf32> to vector<8x128xf32>
      %165 = arith.addf %163, %164 : vector<8x128xf32>
      %c32 = arith.constant 32 : index
      %c0_64 = arith.constant 0 : index
      %166 = vector.load %arg10[%c32, %c0_64] : memref<48x128xf32, #tpu.memory_space<vmem>>, vector<8x128xf32>
      tpu.vector_store %arg10[%c32, %c0_64], %165 {strides = array<i32>} : memref<48x128xf32, #tpu.memory_space<vmem>>, vector<8x128xf32>,
    } else {
    }
    %c0_16 = arith.constant 0 : index
    %c0_17 = arith.constant 0 : index
    %30 = vector.load %arg5[%c0_16, %c0_17] : memref<9x128xf32, #tpu.memory_space<vmem>>, vector<9x128xf32>
    %31 = tpu.iota {dimensions = array<i32: 0>} : vector<16x1xi32>
    %c8_i32_18 = arith.constant 8 : i32
    %c0_i32_19 = arith.constant 0 : i32
    %32 = arith.cmpi eq, %c8_i32_18, %c0_i32_19 : i32
    %c1_i32 = arith.constant 1 : i32
    %33 = arith.select %32, %c1_i32, %c8_i32_18 : i32
    %34 = vector.broadcast %33 : i32 to vector<16x1xi32>
    %35 = arith.remsi %31, %34 : vector<16x1xi32>
    %c0_i32_20 = arith.constant 0 : i32
    %36 = vector.broadcast %c0_i32_20 : i32 to vector<16x1xi32>
    %37 = arith.cmpi ne, %35, %36 : vector<16x1xi32>
    %c0_i32_21 = arith.constant 0 : i32
    %38 = vector.broadcast %c0_i32_21 : i32 to vector<16x1xi32>
    %39 = arith.cmpi slt, %35, %38 : vector<16x1xi32>
    %c0_i32_22 = arith.constant 0 : i32
    %40 = arith.cmpi slt, %33, %c0_i32_22 : i32
    %41 = vector.broadcast %40 : i1 to vector<16x1xi1>
    %42 = vector.broadcast %41 : vector<16x1xi1> to vector<16x1xi1>
    %43 = arith.xori %39, %42 : vector<16x1xi1>
    %44 = arith.andi %43, %37 : vector<16x1xi1>
    %45 = vector.broadcast %33 : i32 to vector<16x1xi32>
    %46 = arith.addi %35, %45 : vector<16x1xi32>
    %47 = arith.select %44, %46, %35 : vector<16x1xi1>, vector<16x1xi32>
    %c0_i32_23 = arith.constant 0 : i32
    %48 = vector.broadcast %c0_i32_23 : i32 to vector<16x1xi32>
    %49 = arith.cmpi ne, %47, %48 : vector<16x1xi32>
    %c7_i32 = arith.constant 7 : i32
    %50 = vector.broadcast %c7_i32 : i32 to vector<16x1xi32>
    %51 = arith.cmpi ne, %47, %50 : vector<16x1xi32>
    %c16_24 = arith.constant 16 : index
    %c0_25 = arith.constant 0 : index
    %52 = vector.load %arg10[%c16_24, %c0_25] : memref<48x128xf32, #tpu.memory_space<vmem>>, vector<16x128xf32>
    %53 = vector.extract_strided_slice %30 {offsets = [4, 0], sizes = [1, 128], strides = [1, 1]} : vector<9x128xf32> to vector<1x128xf32>
    %54 = vector.broadcast %53 : vector<1x128xf32> to vector<16x128xf32>
    %55 = arith.mulf %52, %54 : vector<16x128xf32>
    %c8 = arith.constant 8 : index
    %c0_26 = arith.constant 0 : index
    %56 = vector.load %arg10[%c8, %c0_26] : memref<48x128xf32, #tpu.memory_space<vmem>>, vector<16x128xf32>
    %57 = vector.extract_strided_slice %30 {offsets = [1, 0], sizes = [1, 128], strides = [1, 1]} : vector<9x128xf32> to vector<1x128xf32>
    %58 = vector.broadcast %57 : vector<1x128xf32> to vector<16x128xf32>
    %59 = arith.mulf %56, %58 : vector<16x128xf32>
    %60 = arith.addf %55, %59 : vector<16x128xf32>
    %c24 = arith.constant 24 : index
    %c0_27 = arith.constant 0 : index
    %61 = vector.load %arg10[%c24, %c0_27] : memref<48x128xf32, #tpu.memory_space<vmem>>, vector<16x128xf32>
    %62 = vector.extract_strided_slice %30 {offsets = [7, 0], sizes = [1, 128], strides = [1, 1]} : vector<9x128xf32> to vector<1x128xf32>
    %63 = vector.broadcast %62 : vector<1x128xf32> to vector<16x128xf32>
    %64 = arith.mulf %61, %63 : vector<16x128xf32>
    %65 = arith.addf %60, %64 : vector<16x128xf32>
    %c7 = arith.constant 7 : index
    %c0_28 = arith.constant 0 : index
    %66 = vector.load %arg10[%c7, %c0_28] : memref<48x128xf32, #tpu.memory_space<vmem>>, vector<16x128xf32>
    %67 = vector.extract_strided_slice %30 {offsets = [0, 0], sizes = [1, 128], strides = [1, 1]} : vector<9x128xf32> to vector<1x128xf32>
    %68 = vector.broadcast %67 : vector<1x128xf32> to vector<16x128xf32>
    %69 = arith.mulf %66, %68 : vector<16x128xf32>
    %c15 = arith.constant 15 : index
    %c0_29 = arith.constant 0 : index
    %70 = vector.load %arg10[%c15, %c0_29] : memref<48x128xf32, #tpu.memory_space<vmem>>, vector<16x128xf32>
    %71 = vector.extract_strided_slice %30 {offsets = [3, 0], sizes = [1, 128], strides = [1, 1]} : vector<9x128xf32> to vector<1x128xf32>
    %72 = vector.broadcast %71 : vector<1x128xf32> to vector<16x128xf32>
    %73 = arith.mulf %70, %72 : vector<16x128xf32>
    %74 = arith.addf %69, %73 : vector<16x128xf32>
    %c23 = arith.constant 23 : index
    %c0_30 = arith.constant 0 : index
    %75 = vector.load %arg10[%c23, %c0_30] : memref<48x128xf32, #tpu.memory_space<vmem>>, vector<16x128xf32>
    %76 = vector.extract_strided_slice %30 {offsets = [6, 0], sizes = [1, 128], strides = [1, 1]} : vector<9x128xf32> to vector<1x128xf32>
    %77 = vector.broadcast %76 : vector<1x128xf32> to vector<16x128xf32>
    %78 = arith.mulf %75, %77 : vector<16x128xf32>
    %79 = arith.addf %74, %78 : vector<16x128xf32>
    %c9 = arith.constant 9 : index
    %c0_31 = arith.constant 0 : index
    %80 = vector.load %arg10[%c9, %c0_31] : memref<48x128xf32, #tpu.memory_space<vmem>>, vector<16x128xf32>
    %81 = vector.extract_strided_slice %30 {offsets = [2, 0], sizes = [1, 128], strides = [1, 1]} : vector<9x128xf32> to vector<1x128xf32>
    %82 = vector.broadcast %81 : vector<1x128xf32> to vector<16x128xf32>
    %83 = arith.mulf %80, %82 : vector<16x128xf32>
    %c17 = arith.constant 17 : index
    %c0_32 = arith.constant 0 : index
    %84 = vector.load %arg10[%c17, %c0_32] : memref<48x128xf32, #tpu.memory_space<vmem>>, vector<16x128xf32>
    %85 = vector.extract_strided_slice %30 {offsets = [5, 0], sizes = [1, 128], strides = [1, 1]} : vector<9x128xf32> to vector<1x128xf32>
    %86 = vector.broadcast %85 : vector<1x128xf32> to vector<16x128xf32>
    %87 = arith.mulf %84, %86 : vector<16x128xf32>
    %88 = arith.addf %83, %87 : vector<16x128xf32>
    %c25 = arith.constant 25 : index
    %c0_33 = arith.constant 0 : index
    %89 = vector.load %arg10[%c25, %c0_33] : memref<48x128xf32, #tpu.memory_space<vmem>>, vector<16x128xf32>
    %90 = vector.extract_strided_slice %30 {offsets = [8, 0], sizes = [1, 128], strides = [1, 1]} : vector<9x128xf32> to vector<1x128xf32>
    %91 = vector.broadcast %90 : vector<1x128xf32> to vector<16x128xf32>
    %92 = arith.mulf %89, %91 : vector<16x128xf32>
    %93 = arith.addf %88, %92 : vector<16x128xf32>
    %c0_i32_34 = arith.constant 0 : i32
    %94 = arith.sitofp %c0_i32_34 : i32 to f32
    %95 = vector.shape_cast %49 : vector<16x1xi1> to vector<16x1xi1>
    %96 = vector.broadcast %95 : vector<16x1xi1> to vector<16x128xi1>
    %97 = vector.broadcast %94 : f32 to vector<16x128xf32>
    %98 = arith.select %96, %79, %97 : vector<16x128xi1>, vector<16x128xf32>
    %99 = arith.addf %65, %98 : vector<16x128xf32>
    %c0_i32_35 = arith.constant 0 : i32
    %100 = arith.sitofp %c0_i32_35 : i32 to f32
    %101 = vector.shape_cast %51 : vector<16x1xi1> to vector<16x1xi1>
    %102 = vector.broadcast %101 : vector<16x1xi1> to vector<16x128xi1>
    %103 = vector.broadcast %100 : f32 to vector<16x128xf32>
    %104 = arith.select %102, %93, %103 : vector<16x128xi1>, vector<16x128xf32>
    %105 = arith.addf %99, %104 : vector<16x128xf32>
    %c0_36 = arith.constant 0 : index
    %c0_37 = arith.constant 0 : index
    %106 = vector.load %arg6[%c0_36, %c0_37] : memref<1x128xf32, #tpu.memory_space<vmem>>, vector<1x128xf32>
    %107 = vector.broadcast %106 : vector<1x128xf32> to vector<16x128xf32>
    %108 = arith.addf %105, %107 : vector<16x128xf32>
    %cst_38 = arith.constant 0.707106769 : f32
    %109 = vector.broadcast %cst_38 : f32 to vector<16x128xf32>
    %110 = arith.mulf %108, %109 : vector<16x128xf32>
    %111 = math.absf %110 : vector<16x128xf32>
    %cst_39 = arith.constant 0.327591091 : f32
    %112 = vector.broadcast %cst_39 : f32 to vector<16x128xf32>
    %113 = arith.mulf %112, %111 : vector<16x128xf32>
    %cst_40 = arith.constant 1.000000e+00 : f32
    %114 = vector.broadcast %cst_40 : f32 to vector<16x128xf32>
    %115 = arith.addf %114, %113 : vector<16x128xf32>
    %116 = tpu.reciprocal %115 {approx = true} : vector<16x128xf32> -> vector<16x128xf32>
    %117 = arith.mulf %115, %116 : vector<16x128xf32>
    %cst_41 = arith.constant 2.000000e+00 : f32
    %118 = vector.broadcast %cst_41 : f32 to vector<16x128xf32>
    %119 = arith.subf %118, %117 : vector<16x128xf32>
    %120 = arith.mulf %116, %119 : vector<16x128xf32>
    %121 = arith.mulf %111, %111 : vector<16x128xf32>
    %cst_42 = arith.constant 0.000000e+00 : f32
    %122 = vector.broadcast %cst_42 : f32 to vector<16x128xf32>
    %123 = arith.subf %122, %121 : vector<16x128xf32>
    %124 = math.exp %123 : vector<16x128xf32>
    %cst_43 = arith.constant 1.06140542 : f32
    %125 = vector.broadcast %cst_43 : f32 to vector<16x128xf32>
    %126 = arith.mulf %125, %120 : vector<16x128xf32>
    %cst_44 = arith.constant -1.45315206 : f32
    %127 = vector.broadcast %cst_44 : f32 to vector<16x128xf32>
    %128 = arith.addf %126, %127 : vector<16x128xf32>
    %129 = arith.mulf %128, %120 : vector<16x128xf32>
    %cst_45 = arith.constant 1.42141378 : f32
    %130 = vector.broadcast %cst_45 : f32 to vector<16x128xf32>
    %131 = arith.addf %129, %130 : vector<16x128xf32>
    %132 = arith.mulf %131, %120 : vector<16x128xf32>
    %cst_46 = arith.constant -0.284496725 : f32
    %133 = vector.broadcast %cst_46 : f32 to vector<16x128xf32>
    %134 = arith.addf %132, %133 : vector<16x128xf32>
    %135 = arith.mulf %134, %120 : vector<16x128xf32>
    %cst_47 = arith.constant 0.254829586 : f32
    %136 = vector.broadcast %cst_47 : f32 to vector<16x128xf32>
    %137 = arith.addf %135, %136 : vector<16x128xf32>
    %138 = arith.mulf %137, %120 : vector<16x128xf32>
    %139 = arith.mulf %138, %124 : vector<16x128xf32>
    %cst_48 = arith.constant 1.000000e+00 : f32
    %140 = vector.broadcast %cst_48 : f32 to vector<16x128xf32>
    %141 = arith.subf %140, %139 : vector<16x128xf32>
    %cst_49 = arith.constant 0.000000e+00 : f32
    %142 = vector.broadcast %cst_49 : f32 to vector<16x128xf32>
    %143 = arith.cmpf oge, %110, %142 : vector<16x128xf32>
    %cst_50 = arith.constant 0.000000e+00 : f32
    %144 = vector.broadcast %cst_50 : f32 to vector<16x128xf32>
    %145 = arith.subf %144, %141 : vector<16x128xf32>
    %146 = arith.select %143, %141, %145 : vector<16x128xi1>, vector<16x128xf32>
    %cst_51 = arith.constant 5.000000e-01 : f32
    %147 = vector.broadcast %cst_51 : f32 to vector<16x128xf32>
    %148 = arith.mulf %147, %108 : vector<16x128xf32>
    %cst_52 = arith.constant 1.000000e+00 : f32
    %149 = vector.broadcast %cst_52 : f32 to vector<16x128xf32>
    %150 = arith.addf %149, %146 : vector<16x128xf32>
    %151 = arith.mulf %148, %150 : vector<16x128xf32>
    %c0_53 = arith.constant 0 : index
    %c0_54 = arith.constant 0 : index
    %152 = vector.load %arg7[%c0_53, %c0_54] : memref<128x32xf32, #tpu.memory_space<vmem>>, vector<128x32xf32>
    %cst_55 = arith.constant dense<0.000000e+00> : vector<16x32xf32>
    %153 = tpu.matmul %151, %152, %cst_55 {dimension_numbers = #tpu.dot_dimension_numbers<[1], [0], [0], [1], [0, 0, 1, 1], [], []>} : vector<16x128xf32>, vector<128x32xf32>, vector<16x32xf32> -> vector<16x32xf32>
    %c0_56 = arith.constant 0 : index
    %c0_57 = arith.constant 0 : index
    %154 = vector.load %arg8[%c0_56, %c0_57] : memref<1x32xf32, #tpu.memory_space<vmem>>, vector<1x32xf32>
    %155 = vector.broadcast %154 : vector<1x32xf32> to vector<16x32xf32>
    %156 = arith.addf %153, %155 : vector<16x32xf32>
    %c0_58 = arith.constant 0 : index
    %c0_59 = arith.constant 0 : index
    %c0_60 = arith.constant 0 : index
    %157 = vector.load %arg9[%c0_58, %c0_59, %c0_60] : memref<1x16x32xf32, #tpu.memory_space<vmem>>, vector<1x16x32xf32>
    %158 = vector.shape_cast %157 : vector<1x16x32xf32> to vector<16x32xf32>
    %159 = vector.shape_cast %156 : vector<16x32xf32> to vector<1x16x32xf32>
    tpu.vector_store %arg9[%c0_58, %c0_59, %c0_60], %159 {strides = array<i32>} : memref<1x16x32xf32, #tpu.memory_space<vmem>>, vector<1x16x32xf32>,
    return
  }
  func.func @transform_0(%arg0: i32, %arg1: i32) -> (i32, i32, i32) {
    %c0_i32 = arith.constant 0 : i32
    %c0_i32_0 = arith.constant 0 : i32
    %c0_i32_1 = arith.constant 0 : i32
    return %arg0, %c0_i32, %c0_i32_0 : i32, i32, i32
  }
  func.func @transform_1(%arg0: i32, %arg1: i32) -> (i32, i32) {
    %c0_i32 = arith.constant 0 : i32
    %c0_i32_0 = arith.constant 0 : i32
    %c0_i32_1 = arith.constant 0 : i32
    return %c0_i32, %c0_i32_0 : i32, i32
  }
  func.func @transform_2(%arg0: i32, %arg1: i32) -> (i32, i32) {
    %c0_i32 = arith.constant 0 : i32
    %c0_i32_0 = arith.constant 0 : i32
    %c0_i32_1 = arith.constant 0 : i32
    return %c0_i32, %c0_i32_0 : i32, i32
  }
  func.func @transform_3(%arg0: i32, %arg1: i32) -> (i32, i32) {
    %c0_i32 = arith.constant 0 : i32
    %c0_i32_0 = arith.constant 0 : i32
    %c0_i32_1 = arith.constant 0 : i32
    return %c0_i32, %c0_i32_0 : i32, i32
  }
  func.func @transform_4(%arg0: i32, %arg1: i32) -> (i32, i32) {
    %c0_i32 = arith.constant 0 : i32
    %c0_i32_0 = arith.constant 0 : i32
    %c0_i32_1 = arith.constant 0 : i32
    return %c0_i32, %c0_i32_0 : i32, i32
  }
  func.func @transform_5(%arg0: i32, %arg1: i32) -> (i32, i32) {
    %c0_i32 = arith.constant 0 : i32
    %c0_i32_0 = arith.constant 0 : i32
    %c0_i32_1 = arith.constant 0 : i32
    return %c0_i32, %c0_i32_0 : i32, i32
  }
  func.func @transform_6(%arg0: i32, %arg1: i32) -> (i32, i32) {
    %c0_i32 = arith.constant 0 : i32
    %c0_i32_0 = arith.constant 0 : i32
    %c0_i32_1 = arith.constant 0 : i32
    return %c0_i32, %c0_i32_0 : i32, i32
  }
  func.func @transform_7(%arg0: i32, %arg1: i32) -> (i32, i32, i32) {
    %c0_i32 = arith.constant 0 : i32
    %c0_i32_0 = arith.constant 0 : i32
    return %arg0, %arg1, %c0_i32 : i32, i32, i32
  }
}

</mosaic_0001>

<bundles_post_ra>
// kernel: tpu_custom_call.1
= control target key start
LH: loop header
LB: loop body
LE: loop exit
PB: predicated region body
PF: predicated region fallthrough
CT: control target
= control target key end

     0   :  { %s898_s24 = smov 0   ;;  %s900_s25 = smov 0   ;;  %s1098_s0 = inlined_call_operand.vmem [shape: f32[2,64,32], index: 0, kind: input, shape index: {}]   ;;  %s1099_s1 = inlined_call_operand.vmem [shape: f32[32,128], index: 1, kind: input, shape index: {}]   ;;  %s1100_s2 = inlined_call_operand.vmem [shape: f32[1,128], index: 2, kind: input, shape index: {}]   ;;  %s1101_s3 = inlined_call_operand.vmem [shape: f32[9,128], index: 3, kind: input, shape index: {}]   ;;  %s1102_s4 = inlined_call_operand.vmem [shape: f32[1,128], index: 4, kind: input, shape index: {}]   ;;  %s1103_s5 = inlined_call_operand.vmem [shape: f32[128,32], index: 5, kind: input, shape index: {}]   ;;  %s1104_s6 = inlined_call_operand.vmem [shape: f32[1,32], index: 6, kind: input, shape index: {}]   ;;  %s1105_s7 = inlined_call_operand.vmem [shape: f32[2,64,32], index: 7, kind: output, shape index: {}]  }
   0x1   :  { %s902_s26 = smov 0   ;;  %s904_s27 = smov 0  }
   0x2   :  { %s906_s28 = smov 0  }
   0x3 LB: > { %s26_s29 = sadd.s32 1, %s846_s26  ;;  %s29_s30 = sadd.s32 1, %s850_s27  ;;  %s854_s28 = sphi %s906_s28, %s17_s28   ;;  %s850_s27 = sphi %s904_s27, %s1115_s27   ;;  %s846_s26 = sphi %s902_s26, %s1114_s26   ;;  %s842_s25 = sphi %s900_s25, %s1113_s25   ;;  %s838_s24 = sphi %s898_s24, %s1112_s24  }
   0x4   : > { %p27_p0 = scmp.ge.s32.totalorder %s26_s29, 4  ;;  %p721_p1 = scmp.ge.s32.totalorder %s854_s28, 1 }
   0x5   : > { %p251_p2 = scmp.lt.s32.totalorder %s854_s28, 9 }
   0x6   : > { %s1117_s29 = smov (%p27_p0, %s26_s29), 0  ;;  %s1119_s30 = smov (!%p27_p0, %s29_s30), %s850_s27 }
   0x7   : > { %p252_p3 = pnand %p721_p1, %p251_p2  ;;  %p31_p4 = scmp.ge.s32.totalorder %s1119_s30, 2 }
   0x8   : > { %p287_p5 = scmp.lt.s32.totalorder (!%p252_p3), %s842_s25, 1  ;;  %s724_s12 = sshll.u32 (!%p252_p3), %s838_s24, 1 }
   0x9   : > { %s1121_s30 = smov (%p31_p4, %s1119_s30), 0  ;;  %255 = sbr.rel (%p252_p3) target bundleno = 651 (0x28b), region = 48 }
   0xa   : > { %p295_p6 = scmp.lt.s32.totalorder (!%p252_p3), %s724_s12, 7  ;;  %s727_s13 = sshll.u32 (!%p252_p3), %s838_s24, 4 }
   0xb   : > { %s730_s14 = sadd.s32 (!%p252_p3), 4294967288, %s727_s13  ;;  %p731_p7 = scmp.ne.s32.totalorder (!%p252_p3), %s838_s24, 0 }
   0xe   : > { %v305_v0 = vld [vmem:[%s1099_s1 + $0x18] sm:$0xff]  ;;  %v304_v1 = vld [vmem:[%s1099_s1 + $0x10] sm:$0xff]  ;;  %v303_v2 = vld [vmem:[%s1099_s1 + $0x8] sm:$0xff]  ;;  %s1123_s25 = smov (!%p287_p5, %s842_s25), 1  ;;  %s1125_s12 = smov (!%p295_p6, %s724_s12), 7  ;;  %vm314_vm0 = vcmask 261120  }
   0xf   : > { %333 = vmatpush.msra.mxu0 %v305_v0  ;;  %742 = vmatpush.msra.mxu1 %v305_v0  ;;  %v302_v3 = vld [vmem:[%s1099_s1] sm:$0xff]  ;;  %s741_s18 = sshll.u32 %s1123_s25, 6  ;;  %s725_s19 = sshll.u32 %s1123_s25, 3 }
  0x10   : > { %s947_s22 = scalar_lea.vmem %s1098_s0, %s741_s18  ;;  %s298_s23 = sadd.s32 %s725_s19, %s1125_s12  ;;  %v804_v6 = vld [vmem:[%s1100_s2] ss:$0 sm:$0xff] }
  0x11   : > { %334 = vmatpush.msra.mxu0 %v304_v1  ;;  %743 = vmatpush.msra.mxu1 %v304_v1  ;;  %s726_s8 = sshll.u32 %s298_s23, 3  ;;  %s950_s9 = scalar_lea.vmem %s947_s22, %s727_s13 }
  0x12   : > { %s955_s25 = scalar_lea.vmem %s1105_s7, %s726_s8  ;;  %v309_v4 = vld [vmem:[%s950_s9] sm:$0xff]  ;;  %v310_v5 = vld [vmem:[%s950_s9 + $0x8] sm:$0xff] }
  0x13   : > { %335 = vmatpush.msra.mxu0 %v303_v2  ;;  %744 = vmatpush.msra.mxu1 %v303_v2 }
  0x15   : > { %336 = vmatpush.msra.mxu0 %v302_v3  ;;  %745 = vmatpush.msra.mxu1 %v302_v3 }
  0x16   : > { %728 = vmatmul.msk.f32.vlgmr.msra.gmra.mxu0 %vm314_vm0, %v309_v4  ;;  %729 = vmatmul.msk.f32.vlgmr.msra.gmra.mxu1 %vm314_vm0, %v310_v5 }
  0x93   : > { %v338_v7 = vpop.f32.mrf.mxu0  ;;  %v341_v8 = vpop.f32.mrf.mxu1  ;;  %351 = sbr.rel (%p731_p7) target bundleno = 154 (0x9a), region = 52 }
  0x94   : > { %v339_v9 = vadd.f32 %v804_v6, %v338_v7  ;;  %v342_v10 = vadd.f32 %v804_v6, %v341_v8 }
  0x96   : > { %344 = vst [vmem:[#allocation2 + $0x10] sm:$0xff] %v339_v9 }
  0x97   : > { %345 = vst [vmem:[#allocation2 + $0x18] sm:$0xff] %v342_v10 }
  0x98   : > { %v856_v11 = vmov 0.0  }
  0x99   : > { %352 = vst [vmem:[#allocation2 + $0x8] sm:$0xff] %v856_v11 }
  0x9a PF: > { %p732_p8 = scmp.le.s32.totalorder %s838_s24, 0 }
  0x9b   : > { %s357_s13 = scalar_lea.vmem (!%p732_p8), %s947_s22, %s730_s14 }
  0x9c   : > { %356 = sbr.rel (%p732_p8) target bundleno = 297 (0x129), region = 56 }
  0xa1   : > { %374 = vmatpush.msra.mxu0 %v305_v0  ;;  %v358_v12 = vld [vmem:[%s357_s13] sm:$0xff] }
  0xa3   : > { %375 = vmatpush.msra.mxu0 %v304_v1 }
  0xa5   : > { %376 = vmatpush.msra.mxu0 %v303_v2 }
  0xa7   : > { %377 = vmatpush.msra.mxu0 %v302_v3 }
  0xa8   : > { %733 = vmatmul.msk.f32.vlgmr.msra.gmra.mxu0 %vm314_vm0, %v358_v12 }
 0x125   : > { %v379_v13 = vpop.f32.mrf.mxu0 }
 0x126   : > { %v380_v14 = vadd.f32 %v804_v6, %v379_v13 }
 0x128   : > { %382 = vst [vmem:[#allocation2 + $0x8] sm:$0xff] %v380_v14 }
 0x129 PF: > { %p734_p9 = scmp.ne.s32.totalorder %s838_s24, 3 }
 0x12b   : > { %386 = sbr.rel (%p734_p9) target bundleno = 306 (0x132), region = 60 }
 0x130   : > { %v857_v15 = vmov 0.0  }
 0x131   : > { %387 = vst [vmem:[#allocation2 + $0x20] sm:$0xff] %v857_v15 }
 0x132 PF: > { %p735_p10 = scmp.ge.s32.totalorder %s838_s24, 3 }
 0x134   : > { %391 = sbr.rel (%p735_p10) target bundleno = 449 (0x1c1), region = 64 }
 0x139   : > { %409 = vmatpush.msra.mxu0 %v305_v0  ;;  %v737_v16 = vld [vmem:[%s950_s9 + $0x10] sm:$0xff] }
 0x13b   : > { %410 = vmatpush.msra.mxu0 %v304_v1 }
 0x13d   : > { %411 = vmatpush.msra.mxu0 %v303_v2 }
 0x13f   : > { %412 = vmatpush.msra.mxu0 %v302_v3 }
 0x140   : > { %738 = vmatmul.msk.f32.vlgmr.msra.gmra.mxu0 %vm314_vm0, %v737_v16 }
 0x1bd   : > { %v414_v17 = vpop.f32.mrf.mxu0 }
 0x1be   : > { %v415_v18 = vadd.f32 %v804_v6, %v414_v17 }
 0x1c0   : > { %417 = vst [vmem:[#allocation2 + $0x20] sm:$0xff] %v415_v18 }
 0x1c1 PF: > { %v597_v19 = vld [vmem:[%s1103_s5 + $0x78] sm:$0xff]  ;;  %v596_v20 = vld [vmem:[%s1103_s5 + $0x70] sm:$0xff]  ;;  %v420_v21 = vlaneseq  ;;  %v595_v22 = vld [vmem:[%s1103_s5 + $0x68] sm:$0xff] }
 0x1c2   : > { %602 = vmatpush.msra.mxu0 %v597_v19  ;;  %746 = vmatpush.msra.mxu1 %v597_v19  ;;  %v594_v24 = vld [vmem:[%s1103_s5 + $0x60] sm:$0xff]  ;;  %v593_v25 = vld [vmem:[%s1103_s5 + $0x58] sm:$0xff]  ;;  %v592_v27 = vld [vmem:[%s1103_s5 + $0x50] sm:$0xff] }
 0x1c3   : > { %v421_v23 = vshrl.u32 %v420_v21, 7  ;;  %v990_v26 = vld [vmem:[%s1101_s3] sm:$0xff]  ;;  %v451_v29 = vld [vmem:[#allocation2 + $0x10] sm:$0xff]  ;;  %v456_v31 = vld [vmem:[#allocation2 + $0x8] sm:$0xff] }
 0x1c4   : > { %603 = vmatpush.msra.mxu0 %v596_v20  ;;  %747 = vmatpush.msra.mxu1 %v596_v20  ;;  %v453_v30 = vperm.slane %v990_v26, 4  ;;  %v457_v32 = vperm.slane %v990_v26, 1  ;;  %v463_v33 = vperm.slane %v990_v26, 7  ;;  %v468_v34 = vld [vmem:[#allocation2 + $0x7] sm:$0xff]  ;;  %v469_v35 = vld [vmem:[#allocation2 + $0xf] sm:$0xff]  ;;  %v470_v36 = vperm.slane %v990_v26, 0 }
 0x1c5   : > { %v427_v28 = vand.u32 7, %v421_v23  ;;  %v999_v37 = vadd.s32 8, %v421_v23  ;;  %v452_v38 = vld [vmem:[#allocation2 + $0x18] sm:$0xff]  ;;  %v474_v40 = vperm.slane %v990_v26, 3  ;;  %v480_v41 = vperm.slane %v990_v26, 6  ;;  %v485_v42 = vld [vmem:[#allocation2 + $0x9] sm:$0xff] }
 0x1c6   : > { %604 = vmatpush.msra.mxu0 %v595_v22  ;;  %748 = vmatpush.msra.mxu1 %v595_v22  ;;  %v454_v39 = vmul.f32 %v453_v30, %v451_v29  ;;  %v486_v43 = vld [vmem:[#allocation2 + $0x11] sm:$0xff]  ;;  %v487_v44 = vperm.slane %v990_v26, 2  ;;  %v458_v45 = vmul.f32 %v457_v32, %v456_v31  ;;  %v464_v46 = vmul.f32 %v463_v33, %v452_v38  ;;  %v805_v50 = vld [vmem:[%s1101_s3 + $0x8] ss:$0 sm:$0xff]  ;;  %v590_v61 = vld [vmem:[%s1103_s5 + $0x40] sm:$0xff] }
 0x1c7   : > { %v471_v47 = vmul.f32 %v470_v36, %v468_v34  ;;  %v473_v48 = vld [vmem:[#allocation2 + $0x17] sm:$0xff]  ;;  %v491_v49 = vperm.slane %v990_v26, 5  ;;  %v591_v51 = vld [vmem:[%s1103_s5 + $0x48] sm:$0xff]  ;;  %v475_v52 = vmul.f32 %v474_v40, %v469_v35  ;;  %v434_v59 = vand.u32 7, %v999_v37  ;;  %v462_v60 = vld [vmem:[#allocation2 + $0x20] sm:$0xff] }
 0x1c8   : > { %605 = vmatpush.msra.mxu0 %v594_v24  ;;  %749 = vmatpush.msra.mxu1 %v594_v24  ;;  %v481_v53 = vmul.f32 %v480_v41, %v473_v48  ;;  %v488_v54 = vmul.f32 %v487_v44, %v485_v42  ;;  %v490_v55 = vld [vmem:[#allocation2 + $0x19] sm:$0xff]  ;;  %v460_v56 = vadd.f32 %v458_v45, %v454_v39  ;;  %vm1015_vm1 = vcmp.ne.s32.totalorder %v427_v28, 0  ;;  %v496_v11 = vld [vmem:[#allocation2 + $0x21] sm:$0xff]  ;;  %v588_v16 = vld [vmem:[%s1103_s5 + $0x30] sm:$0xff] }
 0x1c9   : > { %v492_v57 = vmul.f32 %v491_v49, %v486_v43  ;;  %v498_v58 = vmul.f32 %v805_v50, %v490_v55  ;;  %v477_v63 = vadd.f32 %v475_v52, %v471_v47  ;;  %v455_v0 = vmul.f32 %v453_v30, %v452_v38  ;;  %v479_v1 = vld [vmem:[#allocation2 + $0x1f] sm:$0xff]  ;;  %v587_v26 = vld [vmem:[%s1103_s5 + $0x28] sm:$0xff]  ;;  %v584_v39 = vld [vmem:[%s1103_s5 + $0x10] sm:$0xff] }
 0x1ca   : > { %606 = vmatpush.msra.mxu0 %v593_v25  ;;  %750 = vmatpush.msra.mxu1 %v593_v25  ;;  %vm1019_vm2 = vcmp.ne.s32.totalorder %v427_v28, 7  ;;  %v466_v3 = vadd.f32 %v464_v46, %v460_v56  ;;  %v459_v5 = vmul.f32 %v457_v32, %v451_v29  ;;  %v589_v6 = vld [vmem:[%s1103_s5 + $0x38] sm:$0xff]  ;;  %v465_v8 = vmul.f32 %v463_v33, %v462_v60  ;;  %v806_v23 = vld [vmem:[%s1102_s4] ss:$0 sm:$0xff]  ;;  %v583_v42 = vld [vmem:[%s1103_s5 + $0x8] sm:$0xff] }
 0x1cb   : > { %v494_v4 = vadd.f32 %v492_v57, %v488_v54  ;;  %v483_v7 = vadd.f32 %v481_v53, %v477_v63  ;;  %v472_v9 = vmul.f32 %v470_v36, %v469_v35  ;;  %v476_v10 = vmul.f32 %v474_v40, %v473_v48  ;;  %v586_v30 = vld [vmem:[%s1103_s5 + $0x20] sm:$0xff]  ;;  %v585_v35 = vld [vmem:[%s1103_s5 + $0x18] sm:$0xff] }
 0x1cc   : > { %607 = vmatpush.msra.mxu0 %v592_v27  ;;  %751 = vmatpush.msra.mxu1 %v592_v27  ;;  %vm1026_vm3 = vcmp.ne.s32.totalorder %v434_v59, 0  ;;  %v461_v14 = vadd.f32 %v459_v5, %v455_v0  ;;  %v482_v15 = vmul.f32 %v480_v41, %v479_v1  ;;  %v489_v19 = vmul.f32 %v487_v44, %v486_v43  ;;  %v582_v45 = vld [vmem:[%s1103_s5] sm:$0xff] }
 0x1cd   : > { %v500_v12 = vadd.f32 %v498_v58, %v494_v4  ;;  %v506_v17 = vsel %vm1015_vm1, %v483_v7, 0.0  ;;  %v478_v18 = vadd.f32 %v476_v10, %v472_v9  ;;  %v493_v20 = vmul.f32 %v491_v49, %v490_v55 }
 0x1ce   : > { %608 = vmatpush.msra.mxu0 %v591_v51  ;;  %752 = vmatpush.msra.mxu1 %v591_v51  ;;  %v508_v21 = vadd.f32 %v506_v17, %v466_v3  ;;  %v467_v24 = vadd.f32 %v465_v8, %v461_v14  ;;  %v499_v25 = vmul.f32 %v805_v50, %v496_v11  ;;  %vm450_vm4 = vcmp.ne.s32.totalorder %v434_v59, 7 }
 0x1cf   : > { %v514_v22 = vsel %vm1019_vm2, %v500_v12, 0.0  ;;  %v484_v27 = vadd.f32 %v482_v15, %v478_v18  ;;  %v495_v28 = vadd.f32 %v493_v20, %v489_v19 }
 0x1d0   : > { %609 = vmatpush.msra.mxu0 %v590_v61  ;;  %753 = vmatpush.msra.mxu1 %v590_v61  ;;  %v516_v29 = vadd.f32 %v514_v22, %v508_v21 }
 0x1d1   : > { %v501_v31 = vadd.f32 %v499_v25, %v495_v28  ;;  %v507_v32 = vsel %vm1026_vm3, %v484_v27, 0.0 }
 0x1d2   : > { %610 = vmatpush.msra.mxu0 %v589_v6  ;;  %754 = vmatpush.msra.mxu1 %v589_v6  ;;  %v1048_v33 = vadd.f32 %v806_v23, %v516_v29  ;;  %v509_v34 = vadd.f32 %v507_v32, %v467_v24 }
 0x1d3   : > { %v515_v36 = vsel %vm450_vm4, %v501_v31, 0.0 }
 0x1d4   : > { %611 = vmatpush.msra.mxu0 %v588_v16  ;;  %755 = vmatpush.msra.mxu1 %v588_v16  ;;  %v1054_v37 = vmul.f32 0.70710677, %v1048_v33  ;;  %v517_v38 = vadd.f32 %v515_v36, %v509_v34  ;;  %v576_v24 = vmul.f32 0.5, %v1048_v33  ;;  %v807_v33 = vld [vmem:[%s1104_s6] ss:$0 sm:$0xff] }
 0x1d6   : > { %612 = vmatpush.msra.mxu0 %v587_v26  ;;  %756 = vmatpush.msra.mxu1 %v587_v26  ;;  %v526_v40 = vand.u32 2147483647, %v1054_v37  ;;  %v1060_v41 = vadd.f32 %v806_v23, %v517_v38  ;;  %vm570_vm5 = vcmp.ge.f32.partialorder %v1054_v37, 0.0 }
 0x1d8   : > { %613 = vmatpush.msra.mxu0 %v586_v30  ;;  %757 = vmatpush.msra.mxu1 %v586_v30  ;;  %v528_v43 = vmul.f32 0.3275911, %v526_v40  ;;  %v1066_v44 = vmul.f32 0.70710677, %v1060_v41  ;;  %v540_v54 = vmul.f32 %v526_v40, %v526_v40  ;;  %v577_v30 = vmul.f32 0.5, %v1060_v41 }
 0x1da   : > { %614 = vmatpush.msra.mxu0 %v585_v35  ;;  %758 = vmatpush.msra.mxu1 %v585_v35  ;;  %v530_v46 = vadd.f32 1.0, %v528_v43  ;;  %v527_v47 = vand.u32 2147483647, %v1066_v44  ;;  %v542_v59 = vsub.f32 0.0, %v540_v54  ;;  %vm571_vm6 = vcmp.ge.f32.partialorder %v1066_v44, 0.0 }
 0x1dc   : > { %615 = vmatpush.msra.mxu0 %v584_v39  ;;  %759 = vmatpush.msra.mxu1 %v584_v39  ;;  %808 = vrcp.f32 %v530_v46  ;;  %v529_v48 = vmul.f32 0.3275911, %v527_v47  ;;  %v541_v60 = vmul.f32 %v527_v47, %v527_v47  ;;  %v544_v1 = vmul.f32 1.442695, %v542_v59 }
 0x1de   : > { %616 = vmatpush.msra.mxu0 %v583_v42  ;;  %760 = vmatpush.msra.mxu1 %v583_v42  ;;  %v531_v49 = vadd.f32 1.0, %v529_v48  ;;  %v543_v2 = vsub.f32 0.0, %v541_v60 }
 0x1e0   : > { %617 = vmatpush.msra.mxu0 %v582_v45  ;;  %761 = vmatpush.msra.mxu1 %v582_v45  ;;  %810 = vrcp.f32 %v531_v49  ;;  %v546_v7 = vmul.f32 1.442695, %v543_v2 }
 0x1e1   : > { %812 = vpow2.f32 %v544_v1 }
 0x1e2   : > { %v809_v50 = vpop.eup %808  ;;  %814 = vpow2.f32 %v546_v7 }
 0x1e3   : > { %v534_v51 = vmul.f32 %v809_v50, %v530_v46 }
 0x1e5   : > { %v536_v52 = vsub.f32 2.0, %v534_v51 }
 0x1e6   : > { %v811_v53 = vpop.eup %810 }
 0x1e7   : > { %v538_v55 = vmul.f32 %v809_v50, %v536_v52  ;;  %v535_v56 = vmul.f32 %v811_v53, %v531_v49  ;;  %v813_v14 = vpop.eup %812 }
 0x1e8   : > { %v815_v19 = vpop.eup %814 }
 0x1e9   : > { %v548_v57 = vmul.f32 1.0614054, %v538_v55  ;;  %v537_v58 = vsub.f32 2.0, %v535_v56 }
 0x1eb   : > { %v550_v61 = vadd.f32 -1.4531521, %v548_v57  ;;  %v539_v62 = vmul.f32 %v811_v53, %v537_v58 }
 0x1ed   : > { %v552_v63 = vmul.f32 %v550_v61, %v538_v55  ;;  %v549_v0 = vmul.f32 1.0614054, %v539_v62 }
 0x1ef   : > { %v554_v3 = vadd.f32 1.4214138, %v552_v63  ;;  %v551_v4 = vadd.f32 -1.4531521, %v549_v0 }
 0x1f1   : > { %v556_v5 = vmul.f32 %v554_v3, %v538_v55  ;;  %v553_v6 = vmul.f32 %v551_v4, %v539_v62 }
 0x1f3   : > { %v558_v8 = vadd.f32 -0.28449672, %v556_v5  ;;  %v555_v9 = vadd.f32 1.4214138, %v553_v6 }
 0x1f5   : > { %v560_v10 = vmul.f32 %v558_v8, %v538_v55  ;;  %v557_v11 = vmul.f32 %v555_v9, %v539_v62 }
 0x1f7   : > { %v562_v12 = vadd.f32 0.2548296, %v560_v10  ;;  %v559_v13 = vadd.f32 -0.28449672, %v557_v11 }
 0x1f9   : > { %v564_v15 = vmul.f32 %v562_v12, %v538_v55  ;;  %v561_v16 = vmul.f32 %v559_v13, %v539_v62 }
 0x1fb   : > { %v566_v17 = vmul.f32 %v813_v14, %v564_v15  ;;  %v563_v18 = vadd.f32 0.2548296, %v561_v16 }
 0x1fd   : > { %v568_v20 = vsub.f32 1.0, %v566_v17  ;;  %v565_v21 = vmul.f32 %v563_v18, %v539_v62 }
 0x1ff   : > { %v572_v22 = vsub.f32 0.0, %v568_v20  ;;  %v567_v23 = vmul.f32 %v815_v19, %v565_v21 }
 0x201   : > { %v574_v25 = vsel %vm570_vm5, %v568_v20, %v572_v22  ;;  %v569_v26 = vsub.f32 1.0, %v567_v23 }
 0x202   : > { %v578_v27 = vadd.f32 1.0, %v574_v25 }
 0x203   : > { %v573_v28 = vsub.f32 0.0, %v569_v26 }
 0x204   : > { %v580_v29 = vmul.f32 %v578_v27, %v576_v24 }
 0x205   : > { %v575_v31 = vsel %vm571_vm6, %v569_v26, %v573_v28 }
 0x206   : > { %618 = vmatmul.f32.vlgmr.msra.gmra.mxu0 %v580_v29  ;;  %v579_v32 = vadd.f32 1.0, %v575_v31 }
 0x208   : > { %v581_v34 = vmul.f32 %v579_v32, %v577_v30 }
 0x20a   : > { %621 = vmatmul.f32.vlgmr.msra.gmra.mxu1 %v581_v34 }
 0x283   : > { %v619_v35 = vpop.f32.mrf.mxu0 }
 0x284   : > { %v620_v36 = vadd.f32 %v807_v33, %v619_v35 }
 0x286   : > { %625 = vst.msk [vmem:[%s955_s25] sm:$0xff] %vm314_vm0, %v620_v36 }
 0x287   : > { %v622_v37 = vpop.f32.mrf.mxu1 }
 0x288   : > { %v623_v38 = vadd.f32 %v807_v33, %v622_v37 }
 0x28a   : > { %626 = vst.msk [vmem:[%s955_s25 + $0x8] sm:$0xff] %vm314_vm0, %v623_v38 }
 0x28b PF: > { %s17_s28 = sadd.s32 1, %s854_s28   ;;  %s1112_s24 = smov %s846_s26 }
 0x28c   : > { %p14_p11 = scmp.ge.s32.totalorder %s17_s28, 10   ;;  %s1113_s25 = smov %s850_s27 }
 0x28d   : > { %s1114_s26 = smov %s1117_s29  ;;  %s1115_s27 = smov %s1121_s30 }
 0x28e   :  { %16 = sbr.rel (!%p14_p11) target bundleno = 3 (0x3), region = 97 }

</bundles_post_ra>
